<compile_context>
chip_gen: v6e
topology: v6e:2x2x1
jax: 0.10.0
libtpu: 0.0.40
codegen_flags: <defaults>
</compile_context>

<pallas_src>
import functools

import jax
import jax.numpy as jnp
from jax.experimental import pallas as pl
from jax.experimental.pallas import tpu as pltpu

_LANES = 128
_SUBLANES = 8
_MAX_BLOCK_ROWS = 4096   # (4096, 128) f32 tile = 2 MiB per input per step
_NUM_CHUNKS = 2          # leading "parallel" axis (v7x megacore)
# 2 inputs x 2 pipeline buffers x 2 MiB = 8 MiB plus ~10-12 MiB of elementwise
# temporaries; 48 MiB gives >2x headroom and fits every chip (v5e/v6e physical
# VMEM 128 MiB, v7x 64 MiB per TC) while overriding v5e's 16 MiB default.
_VMEM_LIMIT_BYTES = 48 * 1024 * 1024


def _bce_dice_kernel(p_ref, t_ref, out_ref, *, total_rows, block_rows,
                     blocks_per_chunk):
    """Accumulate per-lane partial sums of [-bce, p*t, p+t] for one chunk.

    out_ref block is (1, 24, 128): rows [0:8) = sum of the *un-negated* BCE
    term, rows [8:16) = sum of p*t, rows [16:24) = sum of (p + t).  The block
    stays resident in VMEM across the inner (reduction) grid axis.
    """
    c = pl.program_id(0)
    j = pl.program_id(1)

    @pl.when(j == 0)
    def _():
        out_ref[...] = jnp.zeros_like(out_ref)

    # Logical block index along the row axis.
    b = c * blocks_per_chunk + j
    # True only for the (single) partial tail block of the row slab.
    is_full = (b + 1) * block_rows <= total_rows

    k = block_rows // _SUBLANES

    def fold(x):  # (block_rows, 128) -> (8, 128) via cross-vreg VPU adds
        return jnp.sum(x.reshape(k, _SUBLANES, _LANES), axis=0)

    def accumulate(p, t):
        # PyTorch BCELoss clamps the log terms at -100; with that clamp,
        # p=0, t=0 (masked / zero-padded elements) contributes exactly 0 to
        # every accumulated sum.  The leading negation of the BCE term is
        # applied once in the JAX epilogue.
        log_p = jnp.maximum(jnp.log(p), -100.0)
        log_1mp = jnp.maximum(jnp.log(1.0 - p), -100.0)
        bce_neg = log_1mp + t * (log_p - log_1mp)

        out_ref[0, 0:_SUBLANES, :] += fold(bce_neg)
        out_ref[0, _SUBLANES:2 * _SUBLANES, :] += fold(p * t)
        out_ref[0, 2 * _SUBLANES:3 * _SUBLANES, :] += fold(p + t)

    @pl.when(is_full)
    def _():  # fast path: no iota / compare / selects
        accumulate(p_ref[...], t_ref[...])

    @pl.when(jnp.logical_not(is_full))
    def _():
        # Mask BEFORE the log/mul chain so out-of-range rows of the partial
        # tail tile (possibly NaN garbage) never reach jnp.log.
        p = p_ref[...]
        t = t_ref[...]
        row_ids = jax.lax.broadcasted_iota(jnp.int32, p.shape, 0)
        valid = row_ids < (total_rows - b * block_rows)
        accumulate(jnp.where(valid, p, 0.0), jnp.where(valid, t, 0.0))


@jax.jit
def bce_dice_loss(pred, target):
    """BCE (mean) + (1 - dice_coef) over flattened pred/target, smooth=1."""
    p_flat = pred.reshape(-1).astype(jnp.float32)
    t_flat = target.reshape(-1).astype(jnp.float32)
    n = p_flat.shape[0]

    rows = max(pl.cdiv(n, _LANES), _SUBLANES)
    padded_n = rows * _LANES
    if padded_n != n:
        # Only non-lane-aligned element counts pay this copy (zero pad is
        # inert for every accumulated sum thanks to the -100 log clamp).
        p_flat = jnp.pad(p_flat, (0, padded_n - n))
        t_flat = jnp.pad(t_flat, (0, padded_n - n))
    p2 = p_flat.reshape(rows, _LANES)
    t2 = t_flat.reshape(rows, _LANES)

    block_rows = min(_MAX_BLOCK_ROWS, (rows // _SUBLANES) * _SUBLANES)
    num_blocks = pl.cdiv(rows, block_rows)
    # Use the 2-chunk "parallel" axis only when it divides the block count
    # evenly: avoids a duplicated, fully-masked tail DMA (pure wasted HBM BW)
    # while still letting v7x's two TensorCores both stream HBM.
    if num_blocks >= _NUM_CHUNKS and num_blocks % _NUM_CHUNKS == 0:
        num_chunks = _NUM_CHUNKS
    else:
        num_chunks = 1
    blocks_per_chunk = num_blocks // num_chunks

    def in_map(c, j):
        # With even chunking c*blocks_per_chunk + j < num_blocks always; the
        # clamp is a zero-cost safety net against future chunking changes.
        return (jnp.minimum(c * blocks_per_chunk + j, num_blocks - 1), 0)

    kernel = functools.partial(
        _bce_dice_kernel,
        total_rows=rows,
        block_rows=block_rows,
        blocks_per_chunk=blocks_per_chunk,
    )

    partials = pl.pallas_call(
        kernel,
        out_shape=jax.ShapeDtypeStruct(
            (num_chunks, 3 * _SUBLANES, _LANES), jnp.float32),
        grid_spec=pltpu.PrefetchScalarGridSpec(
            num_scalar_prefetch=0,
            grid=(num_chunks, blocks_per_chunk),
            in_specs=[
                pl.BlockSpec((block_rows, _LANES), in_map),
                pl.BlockSpec((block_rows, _LANES), in_map),
            ],
            out_specs=pl.BlockSpec(
                (1, 3 * _SUBLANES, _LANES), lambda c, j: (c, 0, 0)),
        ),
        compiler_params=pltpu.CompilerParams(
            dimension_semantics=("parallel", "arbitrary"),
            vmem_limit_bytes=_VMEM_LIMIT_BYTES),
    )(p2, t2)

    # Tiny epilogue: reduce the (num_chunks, 3, 8, 128) partial sums to 3
    # scalars and combine (negation of the BCE sum happens here, once).
    sums = jnp.sum(
        partials.reshape(num_chunks, 3, _SUBLANES, _LANES), axis=(0, 2, 3))
    bce_loss = -sums[0] / jnp.float32(n)
    dice_coef = (2.0 * sums[1] + 1.0) / (sums[2] + 1.0)
    return bce_loss + (1.0 - dice_coef)


def _reference(pred, target):
    p = pred.reshape(-1).astype(jnp.float32)
    t = target.reshape(-1).astype(jnp.float32)
    log_p = jnp.maximum(jnp.log(p), -100.0)
    log_1mp = jnp.maximum(jnp.log(1.0 - p), -100.0)
    bce = jnp.mean(-(t * log_p + (1.0 - t) * log_1mp))
    dice = (2.0 * jnp.sum(p * t) + 1.0) / (jnp.sum(p) + jnp.sum(t) + 1.0)
    return bce + (1.0 - dice)


if __name__ == "__main__":
    key = jax.random.PRNGKey(0)

    # Small NCHW case matching the PyTorch module's typical usage
    # (lane-aligned, single block, fast path only).
    k1, k2 = jax.random.split(key)
    logits = jax.random.normal(k1, (2, 4, 16, 16), dtype=jnp.float32)
    pred = jax.nn.sigmoid(logits)            # BCELoss expects probs in [0, 1]
    target = (jax.random.uniform(k2, (2, 4, 16, 16)) > 0.5).astype(jnp.float32)

    loss = bce_dice_loss(pred, target)
    jax.block_until_ready(loss)
    ref = _reference(pred, target)
    assert jnp.allclose(loss, ref, rtol=1e-5, atol=1e-5), (loss, ref)

    # Ragged case: not lane-aligned (pad path), two chunks, masked tail block.
    k3, k4 = jax.random.split(k1)
    shape2 = (2, 3, 70, 67)
    pred2 = jax.nn.sigmoid(jax.random.normal(k3, shape2, dtype=jnp.float32))
    target2 = (jax.random.uniform(k4, shape2) > 0.5).astype(jnp.float32)
    loss2 = bce_dice_loss(pred2, target2)
    jax.block_until_ready(loss2)
    ref2 = _reference(pred2, target2)
    assert jnp.allclose(loss2, ref2, rtol=1e-4, atol=1e-4), (loss2, ref2)

    # Larger case exercising the full 4096-row tile, two chunks and the
    # partial (masked) second block under the explicit VMEM limit.
    k5, k6 = jax.random.split(k2)
    shape3 = (2, 4, 256, 320)
    pred3 = jax.nn.sigmoid(jax.random.normal(k5, shape3, dtype=jnp.float32))
    target3 = (jax.random.uniform(k6, shape3) > 0.5).astype(jnp.float32)
    loss3 = bce_dice_loss(pred3, target3)
    jax.block_until_ready(loss3)
    ref3 = _reference(pred3, target3)
    assert jnp.allclose(loss3, ref3, rtol=1e-4, atol=1e-4), (loss3, ref3)

    print("KERNEL_OK")
</pallas_src>

<mosaic_0001>
module attributes {stable_mosaic.version = 11 : i64} {
  func.func @_bce_dice_kernel(%arg0: i32, %arg1: i32, %arg2: memref<16x128xf32, #tpu.memory_space<vmem>>, %arg3: memref<16x128xf32, #tpu.memory_space<vmem>>, %arg4: memref<1x24x128xf32, #tpu.memory_space<vmem>>) attributes {dimension_semantics = [#tpu.dimension_semantics<parallel>, #tpu.dimension_semantics<arbitrary>], iteration_bounds = array<i64: 1, 1>, scalar_prefetch = 0 : i64, scratch_operands = 0 : i64, tpu.core_type = #tpu.core_type<tc>, window_params = [{transform_indices = @transform_0, window_bounds = array<i64: 16, 128>}, {transform_indices = @transform_1, window_bounds = array<i64: 16, 128>}, {transform_indices = @transform_2, window_bounds = array<i64: 1, 24, 128>}]} {
    %c0_i32 = arith.constant 0 : i32
    %0 = arith.cmpi eq, %arg1, %c0_i32 : i32
    %1 = arith.extui %0 : i1 to i32
    %c0_i32_0 = arith.constant 0 : i32
    %2 = arith.cmpi ne, %1, %c0_i32_0 : i32
    scf.if %2 {
      %cst = arith.constant 0.000000e+00 : f32
      %13 = vector.broadcast %cst : f32 to vector<1x24x128xf32>
      %c0 = arith.constant 0 : index
      %c0_5 = arith.constant 0 : index
      %c0_6 = arith.constant 0 : index
      %14 = vector.load %arg4[%c0, %c0_5, %c0_6] : memref<1x24x128xf32, #tpu.memory_space<vmem>>, vector<1x24x128xf32>
      tpu.vector_store %arg4[%c0, %c0_5, %c0_6], %13 {strides = array<i32>} : memref<1x24x128xf32, #tpu.memory_space<vmem>>, vector<1x24x128xf32>,
    } else {
    }
    %c1_i32 = arith.constant 1 : i32
    %3 = arith.muli %arg0, %c1_i32 : i32
    %4 = arith.addi %3, %arg1 : i32
    %c1_i32_1 = arith.constant 1 : i32
    %5 = arith.addi %4, %c1_i32_1 : i32
    %c16_i32 = arith.constant 16 : i32
    %6 = arith.muli %5, %c16_i32 : i32
    %c16_i32_2 = arith.constant 16 : i32
    %7 = arith.cmpi sle, %6, %c16_i32_2 : i32
    %8 = arith.extui %7 : i1 to i32
    %c0_i32_3 = arith.constant 0 : i32
    %9 = arith.cmpi ne, %8, %c0_i32_3 : i32
    scf.if %9 {
      %c0 = arith.constant 0 : index
      %c0_5 = arith.constant 0 : index
      %13 = vector.load %arg2[%c0, %c0_5] : memref<16x128xf32, #tpu.memory_space<vmem>>, vector<16x128xf32>
      %c0_6 = arith.constant 0 : index
      %c0_7 = arith.constant 0 : index
      %14 = vector.load %arg3[%c0_6, %c0_7] : memref<16x128xf32, #tpu.memory_space<vmem>>, vector<16x128xf32>
      %15 = math.log %13 : vector<16x128xf32>
      %cst = arith.constant -1.000000e+02 : f32
      %16 = vector.broadcast %cst : f32 to vector<16x128xf32>
      %17 = arith.maximumf %15, %16 : vector<16x128xf32>
      %cst_8 = arith.constant 1.000000e+00 : f32
      %18 = vector.broadcast %cst_8 : f32 to vector<16x128xf32>
      %19 = arith.subf %18, %13 : vector<16x128xf32>
      %20 = math.log %19 : vector<16x128xf32>
      %cst_9 = arith.constant -1.000000e+02 : f32
      %21 = vector.broadcast %cst_9 : f32 to vector<16x128xf32>
      %22 = arith.maximumf %20, %21 : vector<16x128xf32>
      %23 = arith.subf %17, %22 : vector<16x128xf32>
      %24 = arith.mulf %14, %23 : vector<16x128xf32>
      %25 = arith.addf %22, %24 : vector<16x128xf32>
      %c0_10 = arith.constant 0 : index
      %c0_11 = arith.constant 0 : index
      %c0_12 = arith.constant 0 : index
      %26 = vector.load %arg4[%c0_10, %c0_11, %c0_12] : memref<1x24x128xf32, #tpu.memory_space<vmem>>, vector<1x8x128xf32>
      %27 = vector.shape_cast %26 : vector<1x8x128xf32> to vector<8x128xf32>
      %28 = vector.shape_cast %25 : vector<16x128xf32> to vector<2x8x128xf32>
      %cst_13 = arith.constant dense<0.000000e+00> : vector<8x128xf32>
      %29 = vector.multi_reduction <add>, %28, %cst_13 [0] : vector<2x8x128xf32> to vector<8x128xf32>
      %30 = arith.addf %27, %29 : vector<8x128xf32>
      %c0_14 = arith.constant 0 : index
      %c0_15 = arith.constant 0 : index
      %c0_16 = arith.constant 0 : index
      %31 = vector.load %arg4[%c0_14, %c0_15, %c0_16] : memref<1x24x128xf32, #tpu.memory_space<vmem>>, vector<1x8x128xf32>
      %32 = vector.shape_cast %31 : vector<1x8x128xf32> to vector<8x128xf32>
      %33 = vector.shape_cast %30 : vector<8x128xf32> to vector<1x8x128xf32>
      tpu.vector_store %arg4[%c0_14, %c0_15, %c0_16], %33 {strides = array<i32>} : memref<1x24x128xf32, #tpu.memory_space<vmem>>, vector<1x8x128xf32>,
      %c0_17 = arith.constant 0 : index
      %c8 = arith.constant 8 : index
      %c0_18 = arith.constant 0 : index
      %34 = vector.load %arg4[%c0_17, %c8, %c0_18] : memref<1x24x128xf32, #tpu.memory_space<vmem>>, vector<1x8x128xf32>
      %35 = vector.shape_cast %34 : vector<1x8x128xf32> to vector<8x128xf32>
      %36 = arith.mulf %13, %14 : vector<16x128xf32>
      %37 = vector.shape_cast %36 : vector<16x128xf32> to vector<2x8x128xf32>
      %cst_19 = arith.constant dense<0.000000e+00> : vector<8x128xf32>
      %38 = vector.multi_reduction <add>, %37, %cst_19 [0] : vector<2x8x128xf32> to vector<8x128xf32>
      %39 = arith.addf %35, %38 : vector<8x128xf32>
      %c0_20 = arith.constant 0 : index
      %c8_21 = arith.constant 8 : index
      %c0_22 = arith.constant 0 : index
      %40 = vector.load %arg4[%c0_20, %c8_21, %c0_22] : memref<1x24x128xf32, #tpu.memory_space<vmem>>, vector<1x8x128xf32>
      %41 = vector.shape_cast %40 : vector<1x8x128xf32> to vector<8x128xf32>
      %42 = vector.shape_cast %39 : vector<8x128xf32> to vector<1x8x128xf32>
      tpu.vector_store %arg4[%c0_20, %c8_21, %c0_22], %42 {strides = array<i32>} : memref<1x24x128xf32, #tpu.memory_space<vmem>>, vector<1x8x128xf32>,
      %c0_23 = arith.constant 0 : index
      %c16 = arith.constant 16 : index
      %c0_24 = arith.constant 0 : index
      %43 = vector.load %arg4[%c0_23, %c16, %c0_24] : memref<1x24x128xf32, #tpu.memory_space<vmem>>, vector<1x8x128xf32>
      %44 = vector.shape_cast %43 : vector<1x8x128xf32> to vector<8x128xf32>
      %45 = arith.addf %13, %14 : vector<16x128xf32>
      %46 = vector.shape_cast %45 : vector<16x128xf32> to vector<2x8x128xf32>
      %cst_25 = arith.constant dense<0.000000e+00> : vector<8x128xf32>
      %47 = vector.multi_reduction <add>, %46, %cst_25 [0] : vector<2x8x128xf32> to vector<8x128xf32>
      %48 = arith.addf %44, %47 : vector<8x128xf32>
      %c0_26 = arith.constant 0 : index
      %c16_27 = arith.constant 16 : index
      %c0_28 = arith.constant 0 : index
      %49 = vector.load %arg4[%c0_26, %c16_27, %c0_28] : memref<1x24x128xf32, #tpu.memory_space<vmem>>, vector<1x8x128xf32>
      %50 = vector.shape_cast %49 : vector<1x8x128xf32> to vector<8x128xf32>
      %51 = vector.shape_cast %48 : vector<8x128xf32> to vector<1x8x128xf32>
      tpu.vector_store %arg4[%c0_26, %c16_27, %c0_28], %51 {strides = array<i32>} : memref<1x24x128xf32, #tpu.memory_space<vmem>>, vector<1x8x128xf32>,
    } else {
    }
    %true = arith.constant true
    %10 = arith.xori %7, %true : i1
    %11 = arith.extui %10 : i1 to i32
    %c0_i32_4 = arith.constant 0 : i32
    %12 = arith.cmpi ne, %11, %c0_i32_4 : i32
    scf.if %12 {
      %c0 = arith.constant 0 : index
      %c0_5 = arith.constant 0 : index
      %13 = vector.load %arg2[%c0, %c0_5] : memref<16x128xf32, #tpu.memory_space<vmem>>, vector<16x128xf32>
      %c0_6 = arith.constant 0 : index
      %c0_7 = arith.constant 0 : index
      %14 = vector.load %arg3[%c0_6, %c0_7] : memref<16x128xf32, #tpu.memory_space<vmem>>, vector<16x128xf32>
      %15 = tpu.iota {dimensions = array<i32: 0>} : vector<16x128xi32>
      %c16_i32_8 = arith.constant 16 : i32
      %16 = arith.muli %4, %c16_i32_8 : i32
      %c16_i32_9 = arith.constant 16 : i32
      %17 = arith.subi %c16_i32_9, %16 : i32
      %18 = vector.broadcast %17 : i32 to vector<16x128xi32>
      %19 = arith.cmpi slt, %15, %18 : vector<16x128xi32>
      %cst = arith.constant 0.000000e+00 : f32
      %20 = vector.broadcast %cst : f32 to vector<16x128xf32>
      %21 = arith.select %19, %13, %20 : vector<16x128xi1>, vector<16x128xf32>
      %cst_10 = arith.constant 0.000000e+00 : f32
      %22 = vector.broadcast %cst_10 : f32 to vector<16x128xf32>
      %23 = arith.select %19, %14, %22 : vector<16x128xi1>, vector<16x128xf32>
      %24 = math.log %21 : vector<16x128xf32>
      %cst_11 = arith.constant -1.000000e+02 : f32
      %25 = vector.broadcast %cst_11 : f32 to vector<16x128xf32>
      %26 = arith.maximumf %24, %25 : vector<16x128xf32>
      %cst_12 = arith.constant 1.000000e+00 : f32
      %27 = vector.broadcast %cst_12 : f32 to vector<16x128xf32>
      %28 = arith.subf %27, %21 : vector<16x128xf32>
      %29 = math.log %28 : vector<16x128xf32>
      %cst_13 = arith.constant -1.000000e+02 : f32
      %30 = vector.broadcast %cst_13 : f32 to vector<16x128xf32>
      %31 = arith.maximumf %29, %30 : vector<16x128xf32>
      %32 = arith.subf %26, %31 : vector<16x128xf32>
      %33 = arith.mulf %23, %32 : vector<16x128xf32>
      %34 = arith.addf %31, %33 : vector<16x128xf32>
      %c0_14 = arith.constant 0 : index
      %c0_15 = arith.constant 0 : index
      %c0_16 = arith.constant 0 : index
      %35 = vector.load %arg4[%c0_14, %c0_15, %c0_16] : memref<1x24x128xf32, #tpu.memory_space<vmem>>, vector<1x8x128xf32>
      %36 = vector.shape_cast %35 : vector<1x8x128xf32> to vector<8x128xf32>
      %37 = vector.shape_cast %34 : vector<16x128xf32> to vector<2x8x128xf32>
      %cst_17 = arith.constant dense<0.000000e+00> : vector<8x128xf32>
      %38 = vector.multi_reduction <add>, %37, %cst_17 [0] : vector<2x8x128xf32> to vector<8x128xf32>
      %39 = arith.addf %36, %38 : vector<8x128xf32>
      %c0_18 = arith.constant 0 : index
      %c0_19 = arith.constant 0 : index
      %c0_20 = arith.constant 0 : index
      %40 = vector.load %arg4[%c0_18, %c0_19, %c0_20] : memref<1x24x128xf32, #tpu.memory_space<vmem>>, vector<1x8x128xf32>
      %41 = vector.shape_cast %40 : vector<1x8x128xf32> to vector<8x128xf32>
      %42 = vector.shape_cast %39 : vector<8x128xf32> to vector<1x8x128xf32>
      tpu.vector_store %arg4[%c0_18, %c0_19, %c0_20], %42 {strides = array<i32>} : memref<1x24x128xf32, #tpu.memory_space<vmem>>, vector<1x8x128xf32>,
      %c0_21 = arith.constant 0 : index
      %c8 = arith.constant 8 : index
      %c0_22 = arith.constant 0 : index
      %43 = vector.load %arg4[%c0_21, %c8, %c0_22] : memref<1x24x128xf32, #tpu.memory_space<vmem>>, vector<1x8x128xf32>
      %44 = vector.shape_cast %43 : vector<1x8x128xf32> to vector<8x128xf32>
      %45 = arith.mulf %21, %23 : vector<16x128xf32>
      %46 = vector.shape_cast %45 : vector<16x128xf32> to vector<2x8x128xf32>
      %cst_23 = arith.constant dense<0.000000e+00> : vector<8x128xf32>
      %47 = vector.multi_reduction <add>, %46, %cst_23 [0] : vector<2x8x128xf32> to vector<8x128xf32>
      %48 = arith.addf %44, %47 : vector<8x128xf32>
      %c0_24 = arith.constant 0 : index
      %c8_25 = arith.constant 8 : index
      %c0_26 = arith.constant 0 : index
      %49 = vector.load %arg4[%c0_24, %c8_25, %c0_26] : memref<1x24x128xf32, #tpu.memory_space<vmem>>, vector<1x8x128xf32>
      %50 = vector.shape_cast %49 : vector<1x8x128xf32> to vector<8x128xf32>
      %51 = vector.shape_cast %48 : vector<8x128xf32> to vector<1x8x128xf32>
      tpu.vector_store %arg4[%c0_24, %c8_25, %c0_26], %51 {strides = array<i32>} : memref<1x24x128xf32, #tpu.memory_space<vmem>>, vector<1x8x128xf32>,
      %c0_27 = arith.constant 0 : index
      %c16 = arith.constant 16 : index
      %c0_28 = arith.constant 0 : index
      %52 = vector.load %arg4[%c0_27, %c16, %c0_28] : memref<1x24x128xf32, #tpu.memory_space<vmem>>, vector<1x8x128xf32>
      %53 = vector.shape_cast %52 : vector<1x8x128xf32> to vector<8x128xf32>
      %54 = arith.addf %21, %23 : vector<16x128xf32>
      %55 = vector.shape_cast %54 : vector<16x128xf32> to vector<2x8x128xf32>
      %cst_29 = arith.constant dense<0.000000e+00> : vector<8x128xf32>
      %56 = vector.multi_reduction <add>, %55, %cst_29 [0] : vector<2x8x128xf32> to vector<8x128xf32>
      %57 = arith.addf %53, %56 : vector<8x128xf32>
      %c0_30 = arith.constant 0 : index
      %c16_31 = arith.constant 16 : index
      %c0_32 = arith.constant 0 : index
      %58 = vector.load %arg4[%c0_30, %c16_31, %c0_32] : memref<1x24x128xf32, #tpu.memory_space<vmem>>, vector<1x8x128xf32>
      %59 = vector.shape_cast %58 : vector<1x8x128xf32> to vector<8x128xf32>
      %60 = vector.shape_cast %57 : vector<8x128xf32> to vector<1x8x128xf32>
      tpu.vector_store %arg4[%c0_30, %c16_31, %c0_32], %60 {strides = array<i32>} : memref<1x24x128xf32, #tpu.memory_space<vmem>>, vector<1x8x128xf32>,
    } else {
    }
    return
  }
  func.func @transform_0(%arg0: i32, %arg1: i32) -> (i32, i32) {
    %c1_i32 = arith.constant 1 : i32
    %0 = arith.muli %arg0, %c1_i32 : i32
    %1 = arith.addi %0, %arg1 : i32
    %c0_i32 = arith.constant 0 : i32
    %2 = arith.minsi %1, %c0_i32 : i32
    %c0_i32_0 = arith.constant 0 : i32
    %c0_i32_1 = arith.constant 0 : i32
    return %2, %c0_i32_0 : i32, i32
  }
  func.func @transform_1(%arg0: i32, %arg1: i32) -> (i32, i32) {
    %c1_i32 = arith.constant 1 : i32
    %0 = arith.muli %arg0, %c1_i32 : i32
    %1 = arith.addi %0, %arg1 : i32
    %c0_i32 = arith.constant 0 : i32
    %2 = arith.minsi %1, %c0_i32 : i32
    %c0_i32_0 = arith.constant 0 : i32
    %c0_i32_1 = arith.constant 0 : i32
    return %2, %c0_i32_0 : i32, i32
  }
  func.func @transform_2(%arg0: i32, %arg1: i32) -> (i32, i32, i32) {
    %c0_i32 = arith.constant 0 : i32
    %c0_i32_0 = arith.constant 0 : i32
    %c0_i32_1 = arith.constant 0 : i32
    return %arg0, %c0_i32, %c0_i32_0 : i32, i32, i32
  }
}

</mosaic_0001>

<bundles_post_ra>
// kernel: bce_dice_loss.1
= control target key start
LH: loop header
LB: loop body
LE: loop exit
PB: predicated region body
PF: predicated region fallthrough
CT: control target
= control target key end

     0   :  { %s246_s0 = inlined_call_operand.vmem [shape: f32[16,128], index: 0, kind: input, shape index: {}]   ;;  %s247_s1 = inlined_call_operand.vmem [shape: f32[16,128], index: 1, kind: input, shape index: {}]   ;;  %s248_s2 = inlined_call_operand.vmem [shape: f32[1,24,128], index: 2, kind: output, shape index: {}]  }
   0x1   :  { %v89_v0 = vld [vmem:[%s246_s0] sm:$0xff]  ;;  %v90_v1 = vld [vmem:[%s246_s0 + $0x8] sm:$0xff] }
   0x2   :  { %v91_v2 = vld [vmem:[%s247_s1] sm:$0xff]  ;;  %v92_v3 = vld [vmem:[%s247_s1 + $0x8] sm:$0xff]  ;;  %202 = vlog2.f32 %v89_v0  ;;  %v99_v4 = vsub.f32 1.0, %v89_v0  ;;  %v100_v5 = vsub.f32 1.0, %v90_v1 }
   0x3   :  { %v118_v6 = vmul.f32 %v91_v2, %v89_v0  ;;  %204 = vlog2.f32 %v90_v1  ;;  %v119_v7 = vmul.f32 %v92_v3, %v90_v1  ;;  %v124_v8 = vadd.f32 %v91_v2, %v89_v0 }
   0x4   :  { %v125_v9 = vadd.f32 %v92_v3, %v90_v1  ;;  %206 = vlog2.f32 %v99_v4 }
   0x5   :  { %208 = vlog2.f32 %v100_v5  ;;  %v120_v10 = vadd.f32 %v119_v7, %v118_v6 }
   0x6   :  { %v126_v11 = vadd.f32 %v125_v9, %v124_v8 }
   0x7   :  { %122 = vst [vmem:[%s248_s2 + $0x8] sm:$0xff] %v120_v10 }
   0x8   :  { %128 = vst [vmem:[%s248_s2 + $0x10] sm:$0xff] %v126_v11 }
   0xf   :  { %v203_v12 = vpop.eup %202 }
  0x10   :  { %v205_v13 = vpop.eup %204  ;;  %v94_v14 = vmul.f32 0.6931472, %v203_v12 }
  0x11   :  { %v207_v15 = vpop.eup %206  ;;  %v96_v16 = vmul.f32 0.6931472, %v205_v13 }
  0x12   :  { %v209_v17 = vpop.eup %208  ;;  %v97_v18 = vmax.f32 %v94_v14, -100.0  ;;  %v102_v19 = vmul.f32 0.6931472, %v207_v15 }
  0x13   :  { %v98_v20 = vmax.f32 %v96_v16, -100.0  ;;  %v104_v21 = vmul.f32 0.6931472, %v209_v17 }
  0x14   :  { %v105_v22 = vmax.f32 %v102_v19, -100.0 }
  0x15   :  { %v106_v23 = vmax.f32 %v104_v21, -100.0 }
  0x16   :  { %v107_v24 = vsub.f32 %v97_v18, %v105_v22 }
  0x17   :  { %v108_v25 = vsub.f32 %v98_v20, %v106_v23 }
  0x18   :  { %v109_v26 = vmul.f32 %v107_v24, %v91_v2 }
  0x19   :  { %v110_v27 = vmul.f32 %v108_v25, %v92_v3 }
  0x1a   :  { %v111_v28 = vadd.f32 %v109_v26, %v105_v22 }
  0x1b   :  { %v112_v29 = vadd.f32 %v110_v27, %v106_v23 }
  0x1d   :  { %v114_v30 = vadd.f32 %v112_v29, %v111_v28 }
  0x1f   :  { %116 = vst [vmem:[%s248_s2] sm:$0xff] %v114_v30 }

</bundles_post_ra>
